<compile_context>
chip_gen: v6e
topology: v6e:2x2x1
jax: 0.10.0
libtpu: 0.0.40
codegen_flags: <defaults>
</compile_context>

<pallas_src>
import jax
import jax.numpy as jnp
from jax.experimental import pallas as pl
from jax.experimental.pallas import tpu as pltpu

SEGMENTS = 16
DEGREE = 1
N_BITS = 24

BLOCK_COLS = 1024   # lane-dense last dim (multiple of 128)
BLOCK_ROWS = 512    # 512 x 1024 f32 = 2 MiB/block; double-buffered in+out fits
                    # the scoped-VMEM default on v5e (16 MiB), v6e/v7x (32 MiB)


# -----------------------------------------------------------------------------
# Plain-JAX glue: I-BERT IntGELU reference curve + per-segment degree-1 fit
# (matches the torch module's per-forward refit; runs once per call)
# -----------------------------------------------------------------------------
def _ibert_int_gelu(x, scaling_factor):
    # TODO(synk): IBERTIntGELU's exact source is not in the provided module;
    # this is the canonical I-BERT IntGELU (int-erf polynomial) formulation.
    k = 1.4142
    const = 14
    a_c = -0.2888
    b_c = -1.769
    c_c = 1.0 / a_c
    x_int = x / scaling_factor
    sf = scaling_factor / k
    b_int = jnp.floor(b_c / sf)
    c_int = jnp.floor(c_c / (sf ** 2))
    sign = jnp.sign(x_int)
    abs_int = jnp.minimum(jnp.abs(x_int), -b_int)
    y_int = sign * ((abs_int + b_int) ** 2 + c_int)
    sf_sig = sf ** 2 * a_c
    y_int = jnp.floor(y_int / (2.0 ** const))
    sf_sig = sf_sig * (2.0 ** const)
    shift_int = jnp.floor(1.0 / sf_sig)           # torch: 1.0 // sigmoid_scaling_factor
    x_int = x_int * (y_int + shift_int)
    sf_out = scaling_factor * sf_sig / 2.0
    return x_int * sf_out, sf_out


def _fit_pieces(x, s):
    """Degree-1 least-squares fit per segment (closed form == np.polyfit(deg=1))."""
    # NOTE: the min/max is a full extra read of x, but it is inherent to the
    # module semantics (per-forward refit).  Cache bounds across calls if the
    # calling code allows it.
    x_lo = jnp.floor(jnp.min(x))
    x_hi = jnp.ceil(jnp.max(x))
    xs = jnp.linspace(x_lo, x_hi, 10000, dtype=jnp.float32)
    ys, _ = _ibert_int_gelu(xs, s)
    bounds = jnp.linspace(x_lo, x_hi, SEGMENTS + 1, dtype=jnp.float32)
    lo_f, hi_f = bounds[:-1], bounds[1:]
    m = ((xs[None, :] >= lo_f[:, None]) & (xs[None, :] <= hi_f[:, None])).astype(jnp.float32)
    n = m.sum(-1)
    sx = (m * xs).sum(-1)
    sy = (m * ys).sum(-1)
    sxx = (m * xs * xs).sum(-1)
    sxy = (m * xs * ys).sum(-1)
    denom = n * sxx - sx * sx
    a = (n * sxy - sx * sy) / denom
    b = (sy - a * sx) / n
    return lo_f, hi_f, a, b


def _quantized_tables(x, s):
    """Torch-equivalent integer tables: lo_i, hi_i and floor'd int coefficients."""
    lo_f, hi_f, a, b = _fit_pieces(x, s)
    lo_i = jnp.floor(lo_f / s)
    hi_i = jnp.floor(hi_f / s)
    c0_int = jnp.floor(a * (s ** 1) * (2.0 ** N_BITS))   # power-1 coefficient
    c1_int = jnp.floor(b * (2.0 ** N_BITS))              # power-0 coefficient
    return (lo_i.astype(jnp.float32), hi_i.astype(jnp.float32),
            c0_int.astype(jnp.float32), c1_int.astype(jnp.float32))


def _floor_div(x, s, inv_s):
    """floor(x / s) via reciprocal multiply + two-sided floor correction.

    Divide-free (VALU is the binding slot); off from true floor(x/s) only when
    x/s lies within half an ulp of an integer.  Shared by kernel and reference
    so both produce bit-identical x_int.
    """
    xi = jnp.floor(x * inv_s)
    too_hi = (xi * s > x).astype(jnp.float32)           # xi one too large
    too_lo = ((xi + 1.0) * s <= x).astype(jnp.float32)  # xi one too small
    return xi - too_hi + too_lo


# -----------------------------------------------------------------------------
# Pallas kernel: elementwise piecewise-polynomial integer GELU
# -----------------------------------------------------------------------------
def _int_gelu_kernel(sc_ref, t_ref, c0_ref, c1_ref, x_ref, o_ref):
    """One (block_rows, ncols) tile.

    sc_ref : SMEM f32[2]  = [s, 1/s]
    t_ref  : SMEM f32[16] = lo_i * s          (raw-input segment thresholds)
    c0_ref : SMEM f32[16] = floor(a*s*2^24) * 2^-24   (slope, /2^24 folded)
    c1_ref : SMEM f32[16] = floor(b*2^24)   * 2^-24   (intercept, /2^24 folded)
    """
    x = x_ref[...].astype(jnp.float32)       # native-dtype load, f32 compute
    s = sc_ref[0]
    inv_s = sc_ref[1]

    # x_int = floor(x / s), divide-free.
    xi = _floor_div(x, s, inv_s)

    # Segment bounds are contiguous (hi_i[i-1] == lo_i[i] by construction), so
    # the torch "later segment overwrites" mask loop is exactly an ascending
    # coefficient-select cascade.  Comparing the raw input against t_i=lo_i*s
    # is equivalent to x_int >= lo_i for s > 0 and does not depend on the
    # floor chain, so the 15 compares pack alongside it.
    c0 = jnp.full_like(x, c0_ref[0])
    c1 = jnp.full_like(x, c1_ref[0])
    for i in range(1, SEGMENTS):             # static unroll, 15 iterations
        ge = x >= t_ref[i]
        c0 = jnp.where(ge, c0_ref[i], c0)
        c1 = jnp.where(ge, c1_ref[i], c1)

    # Coefficients already carry the exact 2^-24 output scale.
    o_ref[...] = c0 * xi + c1


def _tile_layout(total):
    """Lane-dense (rows, cols) layout with bounded row-padding waste."""
    ncols = BLOCK_COLS if total >= 8 * BLOCK_COLS else 128
    rows = -(-total // ncols)
    if rows <= BLOCK_ROWS:
        block_rows = ((rows + 7) // 8) * 8            # single block, 8-row multiple
        return ncols, block_rows, block_rows
    max_waste = max(rows // 16, 63)                   # cap padding waste
    for cand in (512, 256, 128, 64):
        rows_padded = -(-rows // cand) * cand
        if rows_padded - rows <= max_waste:
            return ncols, cand, rows_padded
    rows_padded = -(-rows // 8) * 8                   # unreachable safety net
    return ncols, 8, rows_padded


def icustom_int_gelu(x, scaling_factor):
    """Forward of ICUSTOMIntGELU.  Returns (y, scaling_factor_out)."""
    s = scaling_factor.reshape(()).astype(jnp.float32)
    inv_s = 1.0 / s                                  # scalar, computed once

    lo_i, _hi_i, c0_int, c1_int = _quantized_tables(x, s)
    thresholds = (lo_i * s).astype(jnp.float32)      # x >= lo_i*s <=> x_int >= lo_i
    c0 = (c0_int * (2.0 ** -N_BITS)).astype(jnp.float32)   # exact /2^24 fold
    c1 = (c1_int * (2.0 ** -N_BITS)).astype(jnp.float32)
    sc = jnp.stack([s, inv_s]).astype(jnp.float32)

    orig_shape = x.shape
    flat = x.reshape(-1)                             # native dtype, no astype copy
    total = flat.shape[0]
    ncols, block_rows, rows_padded = _tile_layout(total)
    padded_total = rows_padded * ncols
    needs_pad = padded_total != total                # static (concrete shapes)
    if needs_pad:
        flat = jnp.pad(flat, (0, padded_total - total))
    x2d = flat.reshape(rows_padded, ncols)

    out2d = pl.pallas_call(
        _int_gelu_kernel,
        out_shape=jax.ShapeDtypeStruct((rows_padded, ncols), jnp.float32),
        grid_spec=pl.GridSpec(
            grid=(rows_padded // block_rows,),
            in_specs=[
                pl.BlockSpec(memory_space=pltpu.MemorySpace.SMEM),    # [s, 1/s]
                pl.BlockSpec(memory_space=pltpu.MemorySpace.SMEM),    # thresholds (16,)
                pl.BlockSpec(memory_space=pltpu.MemorySpace.SMEM),    # c0 (16,)
                pl.BlockSpec(memory_space=pltpu.MemorySpace.SMEM),    # c1 (16,)
                pl.BlockSpec((block_rows, ncols), lambda r: (r, 0)),  # x tile (VMEM)
            ],
            out_specs=pl.BlockSpec((block_rows, ncols), lambda r: (r, 0)),
        ),
        # Data-parallel row-block axis; on v7x this lets Mosaic shard the grid
        # across both TensorCores (v5e/v6e have one TC, no effect there).
        compiler_params=pltpu.CompilerParams(dimension_semantics=("parallel",)),
    )(sc, thresholds, c0, c1, x2d)

    if needs_pad:
        y = out2d.reshape(-1)[:total].reshape(orig_shape)
    else:
        y = out2d.reshape(orig_shape)

    # ibert_patch scaling-factor bookkeeping (scalar glue, matches torch code)
    k = 1.4142
    n = 6
    coeff0 = -0.2888
    sf32 = scaling_factor.astype(jnp.float32)
    sf_out = ((sf32 / k) ** 2 / coeff0) * (2.0 ** n)
    return y, sf_out


# -----------------------------------------------------------------------------
# Pure-JAX reference (torch-style segment loop; same divide-free x_int and the
# same threshold predicate -- for s > 0 these are equivalent to the torch
# floor(x/s) / x_int >= lo_i comparisons up to float representation)
# -----------------------------------------------------------------------------
def _reference_forward(x, scaling_factor):
    s = scaling_factor.reshape(()).astype(jnp.float32)
    inv_s = 1.0 / s
    lo_i, _hi_i, c0_int, c1_int = _quantized_tables(x, s)
    t = lo_i * s
    xf = x.astype(jnp.float32)
    xi = _floor_div(xf, s, inv_s)
    y_int = jnp.zeros_like(xi)
    for i in range(SEGMENTS):
        if i == 0:
            mask = xf < t[1]
        elif i == SEGMENTS - 1:
            mask = xf >= t[SEGMENTS - 1]
        else:
            mask = (xf >= t[i]) & (xf < t[i + 1])
        r = c0_int[i] * xi + c1_int[i]
        y_int = jnp.where(mask, r, y_int)            # later segments overwrite
    y = y_int / (2.0 ** N_BITS)
    k = 1.4142
    n = 6
    coeff0 = -0.2888
    sf32 = scaling_factor.astype(jnp.float32)
    sf_out = ((sf32 / k) ** 2 / coeff0) * (2.0 ** n)
    return y, sf_out


if __name__ == "__main__":
    scaling_factor = jnp.array([0.02], dtype=jnp.float32)

    # 1) small transformer-style activation (hidden=32): remainder/pad path
    x_small = jax.random.normal(jax.random.PRNGKey(0), (2, 8, 32), dtype=jnp.float32) * 2.0
    y, sf_out = icustom_int_gelu(x_small, scaling_factor)
    y = jax.block_until_ready(y)
    sf_out = jax.block_until_ready(sf_out)
    y_ref, sf_ref = _reference_forward(x_small, scaling_factor)
    assert y.shape == x_small.shape and y.dtype == jnp.float32
    assert bool(jnp.allclose(y, y_ref, atol=1e-4, rtol=1e-4)), "kernel mismatch vs reference (small)"
    assert bool(jnp.allclose(sf_out, sf_ref, atol=1e-8)), "scaling factor mismatch (small)"

    # 2) lane-dense, exactly-tiling path (last dim multiple of 128, no pad)
    x_big = jax.random.normal(jax.random.PRNGKey(1), (4, 16, 256), dtype=jnp.float32) * 3.0
    y2, sf2 = icustom_int_gelu(x_big, scaling_factor)
    y2 = jax.block_until_ready(y2)
    y2_ref, sf2_ref = _reference_forward(x_big, scaling_factor)
    assert y2.shape == x_big.shape
    assert bool(jnp.allclose(y2, y2_ref, atol=1e-4, rtol=1e-4)), "kernel mismatch vs reference (big)"
    assert bool(jnp.allclose(sf2, sf2_ref, atol=1e-8)), "scaling factor mismatch (big)"

    print("KERNEL_OK")
</pallas_src>

<mosaic_0001>
module attributes {stable_mosaic.version = 11 : i64} {
  func.func @_int_gelu_kernel(%arg0: i32, %arg1: memref<2xf32, #tpu.memory_space<smem>>, %arg2: memref<16xf32, #tpu.memory_space<smem>>, %arg3: memref<16xf32, #tpu.memory_space<smem>>, %arg4: memref<16xf32, #tpu.memory_space<smem>>, %arg5: memref<8x128xf32, #tpu.memory_space<vmem>>, %arg6: memref<8x128xf32, #tpu.memory_space<vmem>>) attributes {dimension_semantics = [#tpu.dimension_semantics<parallel>], iteration_bounds = array<i64: 1>, scalar_prefetch = 0 : i64, scratch_operands = 0 : i64, tpu.core_type = #tpu.core_type<tc>, window_params = [{transform_indices = @transform_0, window_bounds = array<i64: 2>}, {transform_indices = @transform_1, window_bounds = array<i64: 16>}, {transform_indices = @transform_2, window_bounds = array<i64: 16>}, {transform_indices = @transform_3, window_bounds = array<i64: 16>}, {transform_indices = @transform_4, window_bounds = array<i64: 8, 128>}, {transform_indices = @transform_5, window_bounds = array<i64: 8, 128>}]} {
    %c0 = arith.constant 0 : index
    %c0_0 = arith.constant 0 : index
    %0 = vector.load %arg5[%c0, %c0_0] : memref<8x128xf32, #tpu.memory_space<vmem>>, vector<8x128xf32>
    %c0_1 = arith.constant 0 : index
    %1 = memref.load %arg1[%c0_1] : memref<2xf32, #tpu.memory_space<smem>>
    %c1 = arith.constant 1 : index
    %2 = memref.load %arg1[%c1] : memref<2xf32, #tpu.memory_space<smem>>
    %3 = vector.broadcast %2 : f32 to vector<8x128xf32>
    %4 = arith.mulf %0, %3 : vector<8x128xf32>
    %5 = math.floor %4 : vector<8x128xf32>
    %6 = vector.broadcast %1 : f32 to vector<8x128xf32>
    %7 = arith.mulf %5, %6 : vector<8x128xf32>
    %8 = arith.cmpf ogt, %7, %0 : vector<8x128xf32>
    %9 = arith.extui %8 : vector<8x128xi1> to vector<8x128xi32>
    %10 = arith.sitofp %9 : vector<8x128xi32> to vector<8x128xf32>
    %cst = arith.constant 1.000000e+00 : f32
    %11 = vector.broadcast %cst : f32 to vector<8x128xf32>
    %12 = arith.addf %5, %11 : vector<8x128xf32>
    %13 = vector.broadcast %1 : f32 to vector<8x128xf32>
    %14 = arith.mulf %12, %13 : vector<8x128xf32>
    %15 = arith.cmpf ole, %14, %0 : vector<8x128xf32>
    %16 = arith.extui %15 : vector<8x128xi1> to vector<8x128xi32>
    %17 = arith.sitofp %16 : vector<8x128xi32> to vector<8x128xf32>
    %18 = arith.subf %5, %10 : vector<8x128xf32>
    %19 = arith.addf %18, %17 : vector<8x128xf32>
    %c0_2 = arith.constant 0 : index
    %20 = memref.load %arg3[%c0_2] : memref<16xf32, #tpu.memory_space<smem>>
    %21 = vector.broadcast %20 : f32 to vector<8x128xf32>
    %c0_3 = arith.constant 0 : index
    %22 = memref.load %arg4[%c0_3] : memref<16xf32, #tpu.memory_space<smem>>
    %23 = vector.broadcast %22 : f32 to vector<8x128xf32>
    %c1_4 = arith.constant 1 : index
    %24 = memref.load %arg2[%c1_4] : memref<16xf32, #tpu.memory_space<smem>>
    %25 = vector.broadcast %24 : f32 to vector<8x128xf32>
    %26 = arith.cmpf oge, %0, %25 : vector<8x128xf32>
    %c1_5 = arith.constant 1 : index
    %27 = memref.load %arg3[%c1_5] : memref<16xf32, #tpu.memory_space<smem>>
    %28 = vector.broadcast %27 : f32 to vector<8x128xf32>
    %29 = arith.select %26, %28, %21 : vector<8x128xi1>, vector<8x128xf32>
    %c1_6 = arith.constant 1 : index
    %30 = memref.load %arg4[%c1_6] : memref<16xf32, #tpu.memory_space<smem>>
    %31 = vector.broadcast %30 : f32 to vector<8x128xf32>
    %32 = arith.select %26, %31, %23 : vector<8x128xi1>, vector<8x128xf32>
    %c2 = arith.constant 2 : index
    %33 = memref.load %arg2[%c2] : memref<16xf32, #tpu.memory_space<smem>>
    %34 = vector.broadcast %33 : f32 to vector<8x128xf32>
    %35 = arith.cmpf oge, %0, %34 : vector<8x128xf32>
    %c2_7 = arith.constant 2 : index
    %36 = memref.load %arg3[%c2_7] : memref<16xf32, #tpu.memory_space<smem>>
    %37 = vector.broadcast %36 : f32 to vector<8x128xf32>
    %38 = arith.select %35, %37, %29 : vector<8x128xi1>, vector<8x128xf32>
    %c2_8 = arith.constant 2 : index
    %39 = memref.load %arg4[%c2_8] : memref<16xf32, #tpu.memory_space<smem>>
    %40 = vector.broadcast %39 : f32 to vector<8x128xf32>
    %41 = arith.select %35, %40, %32 : vector<8x128xi1>, vector<8x128xf32>
    %c3 = arith.constant 3 : index
    %42 = memref.load %arg2[%c3] : memref<16xf32, #tpu.memory_space<smem>>
    %43 = vector.broadcast %42 : f32 to vector<8x128xf32>
    %44 = arith.cmpf oge, %0, %43 : vector<8x128xf32>
    %c3_9 = arith.constant 3 : index
    %45 = memref.load %arg3[%c3_9] : memref<16xf32, #tpu.memory_space<smem>>
    %46 = vector.broadcast %45 : f32 to vector<8x128xf32>
    %47 = arith.select %44, %46, %38 : vector<8x128xi1>, vector<8x128xf32>
    %c3_10 = arith.constant 3 : index
    %48 = memref.load %arg4[%c3_10] : memref<16xf32, #tpu.memory_space<smem>>
    %49 = vector.broadcast %48 : f32 to vector<8x128xf32>
    %50 = arith.select %44, %49, %41 : vector<8x128xi1>, vector<8x128xf32>
    %c4 = arith.constant 4 : index
    %51 = memref.load %arg2[%c4] : memref<16xf32, #tpu.memory_space<smem>>
    %52 = vector.broadcast %51 : f32 to vector<8x128xf32>
    %53 = arith.cmpf oge, %0, %52 : vector<8x128xf32>
    %c4_11 = arith.constant 4 : index
    %54 = memref.load %arg3[%c4_11] : memref<16xf32, #tpu.memory_space<smem>>
    %55 = vector.broadcast %54 : f32 to vector<8x128xf32>
    %56 = arith.select %53, %55, %47 : vector<8x128xi1>, vector<8x128xf32>
    %c4_12 = arith.constant 4 : index
    %57 = memref.load %arg4[%c4_12] : memref<16xf32, #tpu.memory_space<smem>>
    %58 = vector.broadcast %57 : f32 to vector<8x128xf32>
    %59 = arith.select %53, %58, %50 : vector<8x128xi1>, vector<8x128xf32>
    %c5 = arith.constant 5 : index
    %60 = memref.load %arg2[%c5] : memref<16xf32, #tpu.memory_space<smem>>
    %61 = vector.broadcast %60 : f32 to vector<8x128xf32>
    %62 = arith.cmpf oge, %0, %61 : vector<8x128xf32>
    %c5_13 = arith.constant 5 : index
    %63 = memref.load %arg3[%c5_13] : memref<16xf32, #tpu.memory_space<smem>>
    %64 = vector.broadcast %63 : f32 to vector<8x128xf32>
    %65 = arith.select %62, %64, %56 : vector<8x128xi1>, vector<8x128xf32>
    %c5_14 = arith.constant 5 : index
    %66 = memref.load %arg4[%c5_14] : memref<16xf32, #tpu.memory_space<smem>>
    %67 = vector.broadcast %66 : f32 to vector<8x128xf32>
    %68 = arith.select %62, %67, %59 : vector<8x128xi1>, vector<8x128xf32>
    %c6 = arith.constant 6 : index
    %69 = memref.load %arg2[%c6] : memref<16xf32, #tpu.memory_space<smem>>
    %70 = vector.broadcast %69 : f32 to vector<8x128xf32>
    %71 = arith.cmpf oge, %0, %70 : vector<8x128xf32>
    %c6_15 = arith.constant 6 : index
    %72 = memref.load %arg3[%c6_15] : memref<16xf32, #tpu.memory_space<smem>>
    %73 = vector.broadcast %72 : f32 to vector<8x128xf32>
    %74 = arith.select %71, %73, %65 : vector<8x128xi1>, vector<8x128xf32>
    %c6_16 = arith.constant 6 : index
    %75 = memref.load %arg4[%c6_16] : memref<16xf32, #tpu.memory_space<smem>>
    %76 = vector.broadcast %75 : f32 to vector<8x128xf32>
    %77 = arith.select %71, %76, %68 : vector<8x128xi1>, vector<8x128xf32>
    %c7 = arith.constant 7 : index
    %78 = memref.load %arg2[%c7] : memref<16xf32, #tpu.memory_space<smem>>
    %79 = vector.broadcast %78 : f32 to vector<8x128xf32>
    %80 = arith.cmpf oge, %0, %79 : vector<8x128xf32>
    %c7_17 = arith.constant 7 : index
    %81 = memref.load %arg3[%c7_17] : memref<16xf32, #tpu.memory_space<smem>>
    %82 = vector.broadcast %81 : f32 to vector<8x128xf32>
    %83 = arith.select %80, %82, %74 : vector<8x128xi1>, vector<8x128xf32>
    %c7_18 = arith.constant 7 : index
    %84 = memref.load %arg4[%c7_18] : memref<16xf32, #tpu.memory_space<smem>>
    %85 = vector.broadcast %84 : f32 to vector<8x128xf32>
    %86 = arith.select %80, %85, %77 : vector<8x128xi1>, vector<8x128xf32>
    %c8 = arith.constant 8 : index
    %87 = memref.load %arg2[%c8] : memref<16xf32, #tpu.memory_space<smem>>
    %88 = vector.broadcast %87 : f32 to vector<8x128xf32>
    %89 = arith.cmpf oge, %0, %88 : vector<8x128xf32>
    %c8_19 = arith.constant 8 : index
    %90 = memref.load %arg3[%c8_19] : memref<16xf32, #tpu.memory_space<smem>>
    %91 = vector.broadcast %90 : f32 to vector<8x128xf32>
    %92 = arith.select %89, %91, %83 : vector<8x128xi1>, vector<8x128xf32>
    %c8_20 = arith.constant 8 : index
    %93 = memref.load %arg4[%c8_20] : memref<16xf32, #tpu.memory_space<smem>>
    %94 = vector.broadcast %93 : f32 to vector<8x128xf32>
    %95 = arith.select %89, %94, %86 : vector<8x128xi1>, vector<8x128xf32>
    %c9 = arith.constant 9 : index
    %96 = memref.load %arg2[%c9] : memref<16xf32, #tpu.memory_space<smem>>
    %97 = vector.broadcast %96 : f32 to vector<8x128xf32>
    %98 = arith.cmpf oge, %0, %97 : vector<8x128xf32>
    %c9_21 = arith.constant 9 : index
    %99 = memref.load %arg3[%c9_21] : memref<16xf32, #tpu.memory_space<smem>>
    %100 = vector.broadcast %99 : f32 to vector<8x128xf32>
    %101 = arith.select %98, %100, %92 : vector<8x128xi1>, vector<8x128xf32>
    %c9_22 = arith.constant 9 : index
    %102 = memref.load %arg4[%c9_22] : memref<16xf32, #tpu.memory_space<smem>>
    %103 = vector.broadcast %102 : f32 to vector<8x128xf32>
    %104 = arith.select %98, %103, %95 : vector<8x128xi1>, vector<8x128xf32>
    %c10 = arith.constant 10 : index
    %105 = memref.load %arg2[%c10] : memref<16xf32, #tpu.memory_space<smem>>
    %106 = vector.broadcast %105 : f32 to vector<8x128xf32>
    %107 = arith.cmpf oge, %0, %106 : vector<8x128xf32>
    %c10_23 = arith.constant 10 : index
    %108 = memref.load %arg3[%c10_23] : memref<16xf32, #tpu.memory_space<smem>>
    %109 = vector.broadcast %108 : f32 to vector<8x128xf32>
    %110 = arith.select %107, %109, %101 : vector<8x128xi1>, vector<8x128xf32>
    %c10_24 = arith.constant 10 : index
    %111 = memref.load %arg4[%c10_24] : memref<16xf32, #tpu.memory_space<smem>>
    %112 = vector.broadcast %111 : f32 to vector<8x128xf32>
    %113 = arith.select %107, %112, %104 : vector<8x128xi1>, vector<8x128xf32>
    %c11 = arith.constant 11 : index
    %114 = memref.load %arg2[%c11] : memref<16xf32, #tpu.memory_space<smem>>
    %115 = vector.broadcast %114 : f32 to vector<8x128xf32>
    %116 = arith.cmpf oge, %0, %115 : vector<8x128xf32>
    %c11_25 = arith.constant 11 : index
    %117 = memref.load %arg3[%c11_25] : memref<16xf32, #tpu.memory_space<smem>>
    %118 = vector.broadcast %117 : f32 to vector<8x128xf32>
    %119 = arith.select %116, %118, %110 : vector<8x128xi1>, vector<8x128xf32>
    %c11_26 = arith.constant 11 : index
    %120 = memref.load %arg4[%c11_26] : memref<16xf32, #tpu.memory_space<smem>>
    %121 = vector.broadcast %120 : f32 to vector<8x128xf32>
    %122 = arith.select %116, %121, %113 : vector<8x128xi1>, vector<8x128xf32>
    %c12 = arith.constant 12 : index
    %123 = memref.load %arg2[%c12] : memref<16xf32, #tpu.memory_space<smem>>
    %124 = vector.broadcast %123 : f32 to vector<8x128xf32>
    %125 = arith.cmpf oge, %0, %124 : vector<8x128xf32>
    %c12_27 = arith.constant 12 : index
    %126 = memref.load %arg3[%c12_27] : memref<16xf32, #tpu.memory_space<smem>>
    %127 = vector.broadcast %126 : f32 to vector<8x128xf32>
    %128 = arith.select %125, %127, %119 : vector<8x128xi1>, vector<8x128xf32>
    %c12_28 = arith.constant 12 : index
    %129 = memref.load %arg4[%c12_28] : memref<16xf32, #tpu.memory_space<smem>>
    %130 = vector.broadcast %129 : f32 to vector<8x128xf32>
    %131 = arith.select %125, %130, %122 : vector<8x128xi1>, vector<8x128xf32>
    %c13 = arith.constant 13 : index
    %132 = memref.load %arg2[%c13] : memref<16xf32, #tpu.memory_space<smem>>
    %133 = vector.broadcast %132 : f32 to vector<8x128xf32>
    %134 = arith.cmpf oge, %0, %133 : vector<8x128xf32>
    %c13_29 = arith.constant 13 : index
    %135 = memref.load %arg3[%c13_29] : memref<16xf32, #tpu.memory_space<smem>>
    %136 = vector.broadcast %135 : f32 to vector<8x128xf32>
    %137 = arith.select %134, %136, %128 : vector<8x128xi1>, vector<8x128xf32>
    %c13_30 = arith.constant 13 : index
    %138 = memref.load %arg4[%c13_30] : memref<16xf32, #tpu.memory_space<smem>>
    %139 = vector.broadcast %138 : f32 to vector<8x128xf32>
    %140 = arith.select %134, %139, %131 : vector<8x128xi1>, vector<8x128xf32>
    %c14 = arith.constant 14 : index
    %141 = memref.load %arg2[%c14] : memref<16xf32, #tpu.memory_space<smem>>
    %142 = vector.broadcast %141 : f32 to vector<8x128xf32>
    %143 = arith.cmpf oge, %0, %142 : vector<8x128xf32>
    %c14_31 = arith.constant 14 : index
    %144 = memref.load %arg3[%c14_31] : memref<16xf32, #tpu.memory_space<smem>>
    %145 = vector.broadcast %144 : f32 to vector<8x128xf32>
    %146 = arith.select %143, %145, %137 : vector<8x128xi1>, vector<8x128xf32>
    %c14_32 = arith.constant 14 : index
    %147 = memref.load %arg4[%c14_32] : memref<16xf32, #tpu.memory_space<smem>>
    %148 = vector.broadcast %147 : f32 to vector<8x128xf32>
    %149 = arith.select %143, %148, %140 : vector<8x128xi1>, vector<8x128xf32>
    %c15 = arith.constant 15 : index
    %150 = memref.load %arg2[%c15] : memref<16xf32, #tpu.memory_space<smem>>
    %151 = vector.broadcast %150 : f32 to vector<8x128xf32>
    %152 = arith.cmpf oge, %0, %151 : vector<8x128xf32>
    %c15_33 = arith.constant 15 : index
    %153 = memref.load %arg3[%c15_33] : memref<16xf32, #tpu.memory_space<smem>>
    %154 = vector.broadcast %153 : f32 to vector<8x128xf32>
    %155 = arith.select %152, %154, %146 : vector<8x128xi1>, vector<8x128xf32>
    %c15_34 = arith.constant 15 : index
    %156 = memref.load %arg4[%c15_34] : memref<16xf32, #tpu.memory_space<smem>>
    %157 = vector.broadcast %156 : f32 to vector<8x128xf32>
    %158 = arith.select %152, %157, %149 : vector<8x128xi1>, vector<8x128xf32>
    %159 = arith.mulf %155, %19 : vector<8x128xf32>
    %160 = arith.addf %159, %158 : vector<8x128xf32>
    %c0_35 = arith.constant 0 : index
    %c0_36 = arith.constant 0 : index
    %161 = vector.load %arg6[%c0_35, %c0_36] : memref<8x128xf32, #tpu.memory_space<vmem>>, vector<8x128xf32>
    tpu.vector_store %arg6[%c0_35, %c0_36], %160 {strides = array<i32>} : memref<8x128xf32, #tpu.memory_space<vmem>>, vector<8x128xf32>,
    return
  }
  func.func @transform_0(%arg0: i32) -> i32 {
    %c0_i32 = arith.constant 0 : i32
    %c0_i32_0 = arith.constant 0 : i32
    return %c0_i32 : i32
  }
  func.func @transform_1(%arg0: i32) -> i32 {
    %c0_i32 = arith.constant 0 : i32
    %c0_i32_0 = arith.constant 0 : i32
    return %c0_i32 : i32
  }
  func.func @transform_2(%arg0: i32) -> i32 {
    %c0_i32 = arith.constant 0 : i32
    %c0_i32_0 = arith.constant 0 : i32
    return %c0_i32 : i32
  }
  func.func @transform_3(%arg0: i32) -> i32 {
    %c0_i32 = arith.constant 0 : i32
    %c0_i32_0 = arith.constant 0 : i32
    return %c0_i32 : i32
  }
  func.func @transform_4(%arg0: i32) -> (i32, i32) {
    %c0_i32 = arith.constant 0 : i32
    %c0_i32_0 = arith.constant 0 : i32
    return %arg0, %c0_i32 : i32, i32
  }
  func.func @transform_5(%arg0: i32) -> (i32, i32) {
    %c0_i32 = arith.constant 0 : i32
    %c0_i32_0 = arith.constant 0 : i32
    return %arg0, %c0_i32 : i32, i32
  }
}

</mosaic_0001>

<bundles_post_ra>
// kernel: tpu_custom_call.1
= control target key start
LH: loop header
LB: loop body
LE: loop exit
PB: predicated region body
PF: predicated region fallthrough
CT: control target
= control target key end

     0   :  { %10 = vsyncpa [#allocation5], 0  ;;  %s492_s0 = inlined_call_operand.hbm [shape: f32[2], index: 0, kind: input, shape index: {}]   ;;  %s493_s1 = inlined_call_operand.vmem [shape: f32[16], index: 1, kind: input, shape index: {}]   ;;  %s494_s2 = inlined_call_operand.vmem [shape: f32[16], index: 2, kind: input, shape index: {}]   ;;  %s495_s3 = inlined_call_operand.vmem [shape: f32[16], index: 3, kind: input, shape index: {}]   ;;  %s496_s4 = inlined_call_operand.hbm [shape: f32[8,128], index: 4, kind: input, shape index: {}]   ;;  %s497_s5 = inlined_call_operand.hbm [shape: f32[8,128], index: 5, kind: output, shape index: {}]  }
   0x1   :  { %11 = vsyncpa [#allocation6], 0 }
   0x2   :  { %12 = vsyncpa [#allocation9], 0 }
   0x3   :  { %13 = vsyncpa [#allocation3], 0  ;;  %s39_s20 = sshll.u32 %s494_s2, 4  ;;  %s40_s20 = int_to_ptr.vmem [resolvable:$true] %s39_s20 }
   0x4   :  { %14 = vsyncpa [#allocation4], 0  ;;  %s312_s21 = scalar_lea.vmem %s40_s20, 16  ;;  %p317_p1 = scmp.lt.s32.totalorder %s40_s20, %s40_s20 }
   0x5   :  { %p313_p0 = scmp.ne.s32.totalorder %s40_s20, %s312_s21  ;;  %p318_p2 = scmp.lt.s32.totalorder %s312_s21, %s312_s21 }
   0x7   :  { %p319_p3 = por %p318_p2, %p317_p1 }
   0x9   :  { %p320_p4 = pnand %p319_p3, %p313_p0 }
   0xb   :  { %323 = shalt.err (!%p320_p4)
}
   0xc   :  { %s406_s22 = smov [#allocation8]   ;;  %s407_s23 = smov [#allocation2]  }
   0xd   :  { %42 = dma.vmem_to_smem %s40_s20, 16, %s406_s22, [#allocation9]  }
   0xe   :  { %22 = dma.hbm_to_smem %s492_s0, 16, %s407_s23, [#allocation5]  }
   0xf   :  { %s29_s2 = sshll.u32 %s493_s1, 4  ;;  %s49_s30 = sshll.u32 %s495_s3, 4  ;;  %s30_s2 = int_to_ptr.vmem [resolvable:$true] %s29_s2  ;;  %s50_s30 = int_to_ptr.vmem [resolvable:$true] %s49_s30 }
  0x10   :  { %s332_s6 = scalar_lea.vmem %s30_s2, 16  ;;  %p337_p6 = scmp.lt.s32.totalorder %s30_s2, %s30_s2 }
  0x11   :  { %p333_p5 = scmp.ne.s32.totalorder %s30_s2, %s332_s6  ;;  %p338_p7 = scmp.lt.s32.totalorder %s332_s6, %s332_s6 }
  0x13   :  { %p339_p8 = por %p338_p7, %p337_p6 }
  0x15   :  { %p340_p9 = pnand %p339_p8, %p333_p5 }
  0x17   :  { %343 = shalt.err (!%p340_p9)
}
  0x18   :  { %s408_s7 = smov [#allocation7]   ;;  %s344_s0 = scalar_lea.vmem %s50_s30, 16 }
  0x19   :  { %32 = dma.vmem_to_smem %s30_s2, 16, %s408_s7, [#allocation6]  }
  0x1a   :  { %p345_p10 = scmp.ne.s32.totalorder %s50_s30, %s344_s0  ;;  %p349_p11 = scmp.lt.s32.totalorder %s50_s30, %s50_s30 }
  0x1b   :  { %p350_p12 = scmp.lt.s32.totalorder %s344_s0, %s344_s0 }
  0x1d   :  { %p351_p13 = por %p350_p12, %p349_p11 }
  0x1f   :  { %p352_p0 = pnand %p351_p13, %p345_p10 }
  0x21   :  { %355 = shalt.err (!%p352_p0)
}
  0x22   :  { %s409_s1 = smov [#allocation10]   ;;  %s410_s3 = smov [#allocation11]  }
  0x23   :  { %52 = dma.vmem_to_smem %s50_s30, 16, %s409_s1, [#allocation9]  }
  0x24   :  { %s59_s8 = sshll.u32 %s410_s3, 4  ;;  %s60_s8 = int_to_ptr.vmem [resolvable:$true] %s59_s8 }
  0x25   :  { %s364_s9 = scalar_lea.vmem %s60_s8, 128  ;;  %p369_p2 = scmp.lt.s32.totalorder %s60_s8, %s60_s8 }
  0x26   :  { %p365_p1 = scmp.ne.s32.totalorder %s60_s8, %s364_s9  ;;  %p370_p3 = scmp.lt.s32.totalorder %s364_s9, %s364_s9 }
  0x28   :  { %p371_p4 = por %p370_p3, %p369_p2 }
  0x2a   :  { %p372_p5 = pnand %p371_p4, %p365_p1 }
  0x2c   :  { %375 = shalt.err (!%p372_p5)
}
  0x2d   :  { %62 = dma.hbm_to_vmem [thread:$0]  %s496_s4, 128, %s60_s8, [#allocation3]  }
  0x2e   :  { %396 = dma.done.wait [#allocation5], 16  }
  0x2f   :  { %397 = vsyncadd [#allocation5], 4294967280 }
  0x30   :  { %398 = dma.done.wait [#allocation6], 16  }
  0x31   :  { %399 = vsyncadd [#allocation6], 4294967280 }
  0x32   :  { %400 = dma.done.wait [#allocation9], 32  }
  0x33   :  { %401 = vsyncadd [#allocation9], 4294967264 }
  0x34   :  { %402 = dma.done.wait [#allocation3], 128  }
  0x35   :  { %403 = vsyncadd [#allocation3], 4294967168 }
  0x36   :  { %78 = sfence }
  0x37   :  { %s458_s12 = sld [smem:[#allocation2]]  ;;  %v462_v0 = vld [vmem:[#allocation11] sm:$0xff] }
  0x38   :  { %s460_s13 = sld [smem:[#allocation2 + $0x1]] }
  0x39   :  { %s97_s14 = sld [smem:[#allocation8]] }
  0x3a   :  { %s99_s15 = sld [smem:[#allocation10]] }
  0x3b   :  { %s260_s16 = sld [smem:[#allocation7 + $0x1]] }
  0x3c   :  { %s261_s17 = sld [smem:[#allocation8 + $0x1]] }
  0x3d   :  { %s262_s18 = sld [smem:[#allocation10 + $0x1]]  ;;  %v85_v45 = vstv %s458_s12 }
  0x3e   :  { %s263_s19 = sld [smem:[#allocation7 + $0x2]]  ;;  %v82_v29 = vstv %s460_s13 }
  0x3f   :  { %s264_s4 = sld [smem:[#allocation8 + $0x2]]  ;;  %v98_v1 = vstv %s97_s14  ;;  %v83_v35 = vmul.f32 %v82_v29, %v462_v0 }
  0x40   :  { %s265_s20 = sld [smem:[#allocation10 + $0x2]]  ;;  %v100_v2 = vstv %s99_s15 }
  0x41   :  { %v102_v3 = vstv %s260_s16  ;;  %s266_s21 = sld [smem:[#allocation7 + $0x3]]  ;;  %v474_v42 = vfloor.f32 %v83_v35 }
  0x42   :  { %vm103_vm0 = vcmp.ge.f32.partialorder %v462_v0, %v102_v3  ;;  %v105_v4 = vstv %s261_s17  ;;  %s267_s22 = sld [smem:[#allocation8 + $0x3]]  ;;  %v411_v3 = vmov 0.0  }
  0x43   :  { %v106_v5 = vsel %vm103_vm0, %v105_v4, %v98_v1  ;;  %v108_v6 = vstv %s262_s18  ;;  %s268_s23 = sld [smem:[#allocation10 + $0x3]]  ;;  %v86_v51 = vmul.f32 %v85_v45, %v474_v42  ;;  %v90_v52 = vadd.f32 1.0, %v474_v42 }
  0x44   :  { %v109_v7 = vsel %vm103_vm0, %v108_v6, %v100_v2  ;;  %v111_v8 = vstv %s263_s19  ;;  %s269_s24 = sld [smem:[#allocation7 + $0x4]] }
  0x45   :  { %vm112_vm1 = vcmp.ge.f32.partialorder %v462_v0, %v111_v8  ;;  %v114_v9 = vstv %s264_s4  ;;  %s270_s25 = sld [smem:[#allocation8 + $0x4]]  ;;  %vm87_vm10 = vcmp.gt.f32.partialorder %v86_v51, %v462_v0  ;;  %v91_v60 = vmul.f32 %v90_v52, %v85_v45 }
  0x46   :  { %v115_v10 = vsel %vm112_vm1, %v114_v9, %v106_v5  ;;  %v117_v11 = vstv %s265_s20  ;;  %s271_s26 = sld [smem:[#allocation10 + $0x4]]  ;;  %v258_v4 = vsel %vm87_vm10, 1.0, %v411_v3 }
  0x47   :  { %v118_v12 = vsel %vm112_vm1, %v117_v11, %v109_v7  ;;  %v120_v13 = vstv %s266_s21  ;;  %s272_s27 = sld [smem:[#allocation7 + $0x5]]  ;;  %vm92_vm13 = vcmp.le.f32.partialorder %v91_v60, %v462_v0 }
  0x48   :  { %vm121_vm2 = vcmp.ge.f32.partialorder %v462_v0, %v120_v13  ;;  %v123_v14 = vstv %s267_s22  ;;  %s273_s2 = sld [smem:[#allocation8 + $0x5]] }
  0x49   :  { %v124_v15 = vsel %vm121_vm2, %v123_v14, %v115_v10  ;;  %v126_v16 = vstv %s268_s23  ;;  %s274_s28 = sld [smem:[#allocation10 + $0x5]]  ;;  %v95_v10 = vsub.f32 %v474_v42, %v258_v4 }
  0x4a   :  { %v127_v17 = vsel %vm121_vm2, %v126_v16, %v118_v12  ;;  %v129_v18 = vstv %s269_s24  ;;  %s275_s29 = sld [smem:[#allocation7 + $0x6]]  ;;  %v259_v12 = vsel %vm92_vm13, 1.0, %v411_v3 }
  0x4b   :  { %vm130_vm3 = vcmp.ge.f32.partialorder %v462_v0, %v129_v18  ;;  %v132_v19 = vstv %s270_s25  ;;  %s276_s30 = sld [smem:[#allocation8 + $0x6]]  ;;  %v96_v18 = vadd.f32 %v259_v12, %v95_v10 }
  0x4c   :  { %v133_v20 = vsel %vm130_vm3, %v132_v19, %v124_v15  ;;  %v135_v21 = vstv %s271_s26  ;;  %s277_s6 = sld [smem:[#allocation10 + $0x6]] }
  0x4d   :  { %v136_v22 = vsel %vm130_vm3, %v135_v21, %v127_v17  ;;  %v138_v23 = vstv %s272_s27  ;;  %s278_s7 = sld [smem:[#allocation7 + $0x7]] }
  0x4e   :  { %vm139_vm4 = vcmp.ge.f32.partialorder %v462_v0, %v138_v23  ;;  %v141_v24 = vstv %s273_s2  ;;  %s279_s0 = sld [smem:[#allocation8 + $0x7]] }
  0x4f   :  { %v142_v25 = vsel %vm139_vm4, %v141_v24, %v133_v20  ;;  %v144_v26 = vstv %s274_s28  ;;  %s280_s1 = sld [smem:[#allocation10 + $0x7]] }
  0x50   :  { %v145_v27 = vsel %vm139_vm4, %v144_v26, %v136_v22  ;;  %v147_v28 = vstv %s275_s29  ;;  %s281_s3 = sld [smem:[#allocation7 + $0x8]]  ;;  %s412_s29 = smov [#allocation12]  }
  0x51   :  { %vm148_vm5 = vcmp.ge.f32.partialorder %v462_v0, %v147_v28  ;;  %v150_v30 = vstv %s276_s30  ;;  %s282_s8 = sld [smem:[#allocation8 + $0x8]]  ;;  %s245_s30 = sshll.u32 %s412_s29, 4  ;;  %s246_s30 = int_to_ptr.vmem [resolvable:$true] %s245_s30 }
  0x52   :  { %v151_v31 = vsel %vm148_vm5, %v150_v30, %v142_v25  ;;  %v153_v32 = vstv %s277_s6  ;;  %s283_s9 = sld [smem:[#allocation10 + $0x8]]  ;;  %s376_s6 = scalar_lea.vmem %s246_s30, 128 }
  0x53   :  { %v154_v33 = vsel %vm148_vm5, %v153_v32, %v145_v27  ;;  %v156_v34 = vstv %s278_s7  ;;  %s284_s10 = sld [smem:[#allocation7 + $0x9]]  ;;  %p377_p6 = scmp.ne.s32.totalorder %s246_s30, %s376_s6 }
  0x54   :  { %vm157_vm6 = vcmp.ge.f32.partialorder %v462_v0, %v156_v34  ;;  %v159_v36 = vstv %s279_s0  ;;  %s285_s11 = sld [smem:[#allocation8 + $0x9]]  ;;  %p381_p7 = scmp.lt.s32.totalorder %s246_s30, %s246_s30 }
  0x55   :  { %v160_v37 = vsel %vm157_vm6, %v159_v36, %v151_v31  ;;  %v162_v38 = vstv %s280_s1  ;;  %s286_s13 = sld [smem:[#allocation10 + $0x9]]  ;;  %p382_p8 = scmp.lt.s32.totalorder %s376_s6, %s376_s6 }
  0x56   :  { %v163_v39 = vsel %vm157_vm6, %v162_v38, %v154_v33  ;;  %v165_v40 = vstv %s281_s3  ;;  %s287_s14 = sld [smem:[#allocation7 + $0xa]] }
  0x57   :  { %vm166_vm7 = vcmp.ge.f32.partialorder %v462_v0, %v165_v40  ;;  %v168_v41 = vstv %s282_s8  ;;  %s288_s15 = sld [smem:[#allocation8 + $0xa]]  ;;  %p383_p9 = por %p382_p8, %p381_p7 }
  0x58   :  { %v169_v43 = vsel %vm166_vm7, %v168_v41, %v160_v37  ;;  %v171_v44 = vstv %s283_s9  ;;  %s289_s16 = sld [smem:[#allocation10 + $0xa]] }
  0x59   :  { %v172_v46 = vsel %vm166_vm7, %v171_v44, %v163_v39  ;;  %v174_v47 = vstv %s284_s10  ;;  %s290_s17 = sld [smem:[#allocation7 + $0xb]]  ;;  %p384_p10 = pnand %p383_p9, %p377_p6 }
  0x5a   :  { %vm175_vm8 = vcmp.ge.f32.partialorder %v462_v0, %v174_v47  ;;  %v177_v48 = vstv %s285_s11  ;;  %s291_s18 = sld [smem:[#allocation8 + $0xb]] }
  0x5b   :  { %v178_v49 = vsel %vm175_vm8, %v177_v48, %v169_v43  ;;  %v180_v50 = vstv %s286_s13  ;;  %s292_s19 = sld [smem:[#allocation10 + $0xb]] }
  0x5c   :  { %v181_v53 = vsel %vm175_vm8, %v180_v50, %v172_v46  ;;  %v183_v54 = vstv %s287_s14  ;;  %s293_s4 = sld [smem:[#allocation7 + $0xc]] }
  0x5d   :  { %vm184_vm9 = vcmp.ge.f32.partialorder %v462_v0, %v183_v54  ;;  %v186_v55 = vstv %s288_s15  ;;  %s294_s12 = sld [smem:[#allocation8 + $0xc]] }
  0x5e   :  { %v187_v56 = vsel %vm184_vm9, %v186_v55, %v178_v49  ;;  %v189_v57 = vstv %s289_s16  ;;  %s295_s20 = sld [smem:[#allocation10 + $0xc]] }
  0x5f   :  { %v190_v58 = vsel %vm184_vm9, %v189_v57, %v181_v53  ;;  %v192_v59 = vstv %s290_s17  ;;  %s296_s21 = sld [smem:[#allocation7 + $0xd]] }
  0x60   :  { %vm193_vm11 = vcmp.ge.f32.partialorder %v462_v0, %v192_v59  ;;  %v195_v61 = vstv %s291_s18  ;;  %s297_s22 = sld [smem:[#allocation8 + $0xd]] }
  0x61   :  { %v196_v62 = vsel %vm193_vm11, %v195_v61, %v187_v56  ;;  %v198_v63 = vstv %s292_s19  ;;  %s298_s23 = sld [smem:[#allocation10 + $0xd]] }
  0x62   :  { %v199_v1 = vsel %vm193_vm11, %v198_v63, %v190_v58  ;;  %v201_v2 = vstv %s293_s4  ;;  %s299_s24 = sld [smem:[#allocation7 + $0xe]] }
  0x63   :  { %vm202_vm12 = vcmp.ge.f32.partialorder %v462_v0, %v201_v2  ;;  %v204_v5 = vstv %s294_s12  ;;  %s300_s25 = sld [smem:[#allocation8 + $0xe]] }
  0x64   :  { %v205_v6 = vsel %vm202_vm12, %v204_v5, %v196_v62  ;;  %v207_v7 = vstv %s295_s20  ;;  %s301_s26 = sld [smem:[#allocation10 + $0xe]] }
  0x65   :  { %v208_v8 = vsel %vm202_vm12, %v207_v7, %v199_v1  ;;  %v210_v9 = vstv %s296_s21  ;;  %s302_s27 = sld [smem:[#allocation7 + $0xf]] }
  0x66   :  { %vm211_vm14 = vcmp.ge.f32.partialorder %v462_v0, %v210_v9  ;;  %v213_v11 = vstv %s297_s22  ;;  %s303_s2 = sld [smem:[#allocation8 + $0xf]] }
  0x67   :  { %v214_v13 = vsel %vm211_vm14, %v213_v11, %v205_v6  ;;  %v216_v14 = vstv %s298_s23  ;;  %s304_s28 = sld [smem:[#allocation10 + $0xf]] }
  0x68   :  { %v217_v15 = vsel %vm211_vm14, %v216_v14, %v208_v8  ;;  %v219_v16 = vstv %s299_s24 }
  0x69   :  { %vm220_vm15 = vcmp.ge.f32.partialorder %v462_v0, %v219_v16  ;;  %v222_v17 = vstv %s300_s25 }
  0x6a   :  { %v223_v19 = vsel %vm220_vm15, %v222_v17, %v214_v13  ;;  %v225_v20 = vstv %s301_s26 }
  0x6b   :  { %v226_v21 = vsel %vm220_vm15, %v225_v20, %v217_v15  ;;  %v228_v22 = vstv %s302_s27 }
  0x6c   :  { %vm229_vm0 = vcmp.ge.f32.partialorder %v462_v0, %v228_v22  ;;  %v231_v23 = vstv %s303_s2 }
  0x6d   :  { %v232_v24 = vsel %vm229_vm0, %v231_v23, %v223_v19  ;;  %v234_v25 = vstv %s304_s28 }
  0x6e   :  { %v235_v26 = vsel %vm229_vm0, %v234_v25, %v226_v21  ;;  %v236_v27 = vmul.f32 %v232_v24, %v96_v18 }
  0x70   :  { %v237_v28 = vadd.f32 %v236_v27, %v235_v26 }
  0x72   :  { %238 = vst [vmem:[#allocation12] sm:$0xff] %v237_v28 }
  0x73   :  { %387 = shalt.err (!%p384_p10)
}
  0x74   :  { %248 = dma.vmem_to_hbm [thread:$0]  %s246_s30, 128, %s497_s5, [#allocation4]  }
  0x75   :  { %404 = dma.done.wait [#allocation4], 128  }
  0x76   :  { %405 = vsyncadd [#allocation4], 4294967168 }
  0x77   :  { %252 = vsyncpa [#allocation3], 1 }
  0x78   :  { %253 = vsyncpa [#allocation4], 1 }
  0x79   :  { %254 = vsyncpa [#allocation5], 1 }
  0x7a   :  { %255 = vsyncpa [#allocation6], 1 }
  0x7b   :  { %256 = vsyncpa [#allocation9], 1 }

</bundles_post_ra>
